<compile_context>
chip_gen: v6e
topology: v6e:2x2x1
jax: 0.10.0
libtpu: 0.0.40
codegen_flags: <defaults>
</compile_context>

<pallas_src>
from functools import partial

import jax
import jax.numpy as jnp
from jax import lax
from jax.experimental import pallas as pl
from jax.experimental.pallas import tpu as pltpu


def _sum11(v):
    """(R, C) -> (1, 1) full reduction; keeps every intermediate >= rank 2."""
    return jnp.sum(jnp.sum(v, axis=1, keepdims=True), axis=0, keepdims=True)


def _drc_loss_kernel(n_true, tile_r, needs_mask,
                     pred_ref, lab_ref,
                     ce_ref, dl_ref,
                     cep_acc, cen_acc, npos_acc, s_acc, plab_acc):
    """Streams one (tile_r, C) slab of one image per grid step.

    pred_ref / lab_ref : (1, tile_r, C) native-dtype logits / label weights
    ce_ref / dl_ref    : (1, 1, 1) f32 per-image CE / inverse-dice outputs
    *_acc              : (1, 1) f32 VMEM accumulators (reset at k == 0)
    """
    eps = 1e-6
    k = pl.program_id(1)
    nk = pl.num_programs(1)

    @pl.when(k == 0)
    def _init():
        for acc in (cep_acc, cen_acc, npos_acc, s_acc, plab_acc):
            acc[...] = jnp.zeros_like(acc)

    x = pred_ref[0].astype(jnp.float32)        # (tile_r, C)
    lab = lab_ref[0].astype(jnp.float32)       # (tile_r, C)

    p = jax.nn.sigmoid(x)                      # 1 EUP op / elem
    pc = jnp.clip(p, eps, 1.0 - eps)
    pos = lab > 0.0
    neg = lab == 0.0

    if needs_mask:
        # padded tail: lab == 0 and sigmoid(0) == 0.5 would otherwise corrupt
        # the negative-CE sum and sum(p); mask via the flat per-image index.
        c = x.shape[1]
        row = lax.broadcasted_iota(jnp.int32, x.shape, 0)
        col = lax.broadcasted_iota(jnp.int32, x.shape, 1)
        flat = (k * tile_r + row) * c + col
        valid = flat < n_true
        neg = jnp.logical_and(neg, valid)
        p_dice = jnp.where(valid, p, 0.0)
    else:
        p_dice = p

    # single log shared between the positive / negative CE branches (EUP).
    nl = -jnp.log(jnp.where(pos, pc, 1.0 - pc))

    cep_acc[...] += _sum11(jnp.where(pos, nl * lab, 0.0))
    cen_acc[...] += _sum11(jnp.where(neg, nl, 0.0))
    npos_acc[...] += _sum11(jnp.where(pos, 1.0, 0.0))
    s_acc[...] += _sum11(p_dice + lab)          # sum(p) + sum(lab), fused
    plab_acc[...] += _sum11(p * lab)

    @pl.when(k == nk - 1)
    def _finalize():
        npos = npos_acc[...]
        # annotation weights are >= 0, so #neg = N - #pos (saves a reduction).
        nneg = jnp.float32(n_true) - npos
        ce_ref[0] = cep_acc[...] / npos + cen_acc[...] / nneg
        dl_ref[0] = (s_acc[...] + eps) / (2.0 * plab_acc[...] + eps)


def _round_up(x, m):
    return ((x + m - 1) // m) * m


def drc_loss(pred, labels, w1, w2, cfg_c=0.1, lane_tile=512, row_tile=256):
    """Pallas DRCLoss forward. pred / labels: (B, ...) any trailing dims."""
    b = pred.shape[0]
    pred2 = pred.reshape(b, -1)        # native dtype; cast happens in-kernel
    lab2 = labels.reshape(b, -1)
    n = pred2.shape[1]

    # Lane/sublane-dense per-image layout: (rows, c) with c % 128 == 0 and
    # rows % 8 == 0 -> full vreg utilisation and no HBM sublane padding.
    c = min(_round_up(lane_tile, 128), _round_up(n, 128))
    rows = pl.cdiv(n, c)
    tile_r = min(_round_up(row_tile, 8), _round_up(rows, 8))
    k = pl.cdiv(rows, tile_r)
    r_pad = k * tile_r
    n_pad = r_pad * c
    needs_mask = n_pad != n
    if needs_mask:
        pad = ((0, 0), (0, n_pad - n))
        pred2 = jnp.pad(pred2, pad)
        lab2 = jnp.pad(lab2, pad)
    pred3 = pred2.reshape(b, r_pad, c)
    lab3 = lab2.reshape(b, r_pad, c)

    grid_spec = pltpu.PrefetchScalarGridSpec(
        num_scalar_prefetch=0,
        grid=(b, k),
        in_specs=[
            pl.BlockSpec((1, tile_r, c), lambda bi, ki: (bi, ki, 0)),
            pl.BlockSpec((1, tile_r, c), lambda bi, ki: (bi, ki, 0)),
        ],
        out_specs=[
            pl.BlockSpec((1, 1, 1), lambda bi, ki: (bi, 0, 0)),
            pl.BlockSpec((1, 1, 1), lambda bi, ki: (bi, 0, 0)),
        ],
        scratch_shapes=[pltpu.VMEM((1, 1), jnp.float32) for _ in range(5)],
    )

    ce_img, dl_img = pl.pallas_call(
        partial(_drc_loss_kernel, n, tile_r, needs_mask),
        grid_spec=grid_spec,
        out_shape=(
            jax.ShapeDtypeStruct((b, 1, 1), jnp.float32),
            jax.ShapeDtypeStruct((b, 1, 1), jnp.float32),
        ),
        compiler_params=pltpu.CompilerParams(
            dimension_semantics=("parallel", "arbitrary"),
            vmem_limit_bytes=32 * 1024 * 1024,
        ),
    )(pred3, lab3)

    # batch mean + uncertainty-weighted combination: O(B) ops, plain JAX.
    w1 = jnp.asarray(w1, jnp.float32)
    w2 = jnp.asarray(w2, jnp.float32)
    ce = jnp.mean(ce_img)
    dice_loss = jnp.mean(dl_img)
    return ((1.0 / (w1 * w1)) * ce
            + (1.0 / (w2 * w2)) * cfg_c * dice_loss
            + jnp.log(1.0 + w1 * w2))


def drc_loss_ref(pred, labels, w1, w2, cfg_c=0.1):
    """Pure-JAX reference mirroring the PyTorch module."""
    b = pred.shape[0]
    eps = 1e-6
    p = jax.nn.sigmoid(pred.reshape(b, -1).astype(jnp.float32))
    lab = labels.reshape(b, -1).astype(jnp.float32)
    pc = jnp.clip(p, eps, 1.0 - eps)
    pos = lab > 0.0
    neg = lab == 0.0
    ce = (jnp.sum(jnp.where(pos, -jnp.log(pc) * lab, 0.0), axis=1)
          / jnp.sum(pos, axis=1)
          + jnp.sum(jnp.where(neg, -jnp.log(1.0 - pc), 0.0), axis=1)
          / jnp.sum(neg, axis=1)).mean()
    dice = (2.0 * jnp.sum(p * lab, axis=1) + eps) / (
        jnp.sum(p, axis=1) + jnp.sum(lab, axis=1) + eps)
    dice_loss = (1.0 / dice).mean()
    return ((1.0 / (w1 * w1)) * ce
            + (1.0 / (w2 * w2)) * cfg_c * dice_loss
            + jnp.log(1.0 + w1 * w2))


if __name__ == "__main__":
    key = jax.random.PRNGKey(0)

    def make_inputs(k, shape):
        k_pred, k_mask, k_w = jax.random.split(k, 3)
        pred = jax.random.normal(k_pred, shape, dtype=jnp.float32)
        # labels: 0 for background, positive annotation weight for foreground
        mask = jax.random.bernoulli(k_mask, 0.5, shape)
        ann_w = jax.random.uniform(k_w, shape, minval=0.5, maxval=2.0,
                                   dtype=jnp.float32)
        labels = jnp.where(mask, ann_w, 0.0).astype(jnp.float32)
        return pred, labels

    # module __init__: weight1 = weight2 = 1.0, cfg_c = 0.1
    w1 = jnp.float32(1.0)
    w2 = jnp.float32(1.0)
    cfg_c = 0.1

    k1, k2 = jax.random.split(key)

    # case 1: N = 4*32*32 = 4096, C=128 rows=32 tile_r=8 -> 4-step accumulation
    pred, labels = make_inputs(k1, (2, 4, 32, 32))
    loss = jax.block_until_ready(drc_loss(pred, labels, w1, w2, cfg_c,
                                          lane_tile=128, row_tile=8))
    loss_ref = jax.block_until_ready(drc_loss_ref(pred, labels, w1, w2, cfg_c))
    assert jnp.isfinite(loss), "loss is not finite"
    assert jnp.allclose(loss, loss_ref, rtol=1e-5, atol=1e-5), (
        f"mismatch (multi-tile): kernel={loss} ref={loss_ref}")

    # case 2: ragged N = 4*30*32 = 3840 (padded to 4096) -> validity-mask path
    pred_r, labels_r = make_inputs(k2, (2, 4, 30, 32))
    loss = jax.block_until_ready(drc_loss(pred_r, labels_r, w1, w2, cfg_c,
                                          lane_tile=128, row_tile=8))
    loss_ref = jax.block_until_ready(
        drc_loss_ref(pred_r, labels_r, w1, w2, cfg_c))
    assert jnp.isfinite(loss), "loss is not finite"
    assert jnp.allclose(loss, loss_ref, rtol=1e-5, atol=1e-5), (
        f"mismatch (ragged): kernel={loss} ref={loss_ref}")

    # case 3: default production tiling (single block per image, no padding)
    loss = jax.block_until_ready(drc_loss(pred, labels, w1, w2, cfg_c))
    loss_ref = jax.block_until_ready(drc_loss_ref(pred, labels, w1, w2, cfg_c))
    assert jnp.isfinite(loss), "loss is not finite"
    assert jnp.allclose(loss, loss_ref, rtol=1e-5, atol=1e-5), (
        f"mismatch (default tiles): kernel={loss} ref={loss_ref}")

    print("KERNEL_OK")
</pallas_src>

<mosaic_0001>
module attributes {stable_mosaic.version = 11 : i64} {
  func.func @_drc_loss_kernel(%arg0: i32, %arg1: i32, %arg2: memref<1x8x128xf32, #tpu.memory_space<vmem>>, %arg3: memref<1x8x128xf32, #tpu.memory_space<vmem>>, %arg4: memref<1x1x1xf32, #tpu.memory_space<vmem>>, %arg5: memref<1x1x1xf32, #tpu.memory_space<vmem>>, %arg6: memref<1x1xf32, #tpu.memory_space<vmem>>, %arg7: memref<1x1xf32, #tpu.memory_space<vmem>>, %arg8: memref<1x1xf32, #tpu.memory_space<vmem>>, %arg9: memref<1x1xf32, #tpu.memory_space<vmem>>, %arg10: memref<1x1xf32, #tpu.memory_space<vmem>>) attributes {dimension_semantics = [#tpu.dimension_semantics<parallel>, #tpu.dimension_semantics<arbitrary>], iteration_bounds = array<i64: 2, 4>, scalar_prefetch = 0 : i64, scratch_operands = 5 : i64, tpu.core_type = #tpu.core_type<tc>, window_params = [{transform_indices = @transform_0, window_bounds = array<i64: 1, 8, 128>}, {transform_indices = @transform_1, window_bounds = array<i64: 1, 8, 128>}, {transform_indices = @transform_2, window_bounds = array<i64: 1, 1, 1>}, {transform_indices = @transform_3, window_bounds = array<i64: 1, 1, 1>}]} {
    %c0_i32 = arith.constant 0 : i32
    %0 = arith.cmpi eq, %arg1, %c0_i32 : i32
    %1 = arith.extui %0 : i1 to i32
    %c0_i32_0 = arith.constant 0 : i32
    %2 = arith.cmpi ne, %1, %c0_i32_0 : i32
    scf.if %2 {
      %cst_47 = arith.constant 0.000000e+00 : f32
      %74 = vector.broadcast %cst_47 : f32 to vector<1x1xf32>
      %c0_48 = arith.constant 0 : index
      %c0_49 = arith.constant 0 : index
      %75 = vector.load %arg6[%c0_48, %c0_49] : memref<1x1xf32, #tpu.memory_space<vmem>>, vector<1x1xf32>
      tpu.vector_store %arg6[%c0_48, %c0_49], %74 {strides = array<i32>} : memref<1x1xf32, #tpu.memory_space<vmem>>, vector<1x1xf32>,
      %cst_50 = arith.constant 0.000000e+00 : f32
      %76 = vector.broadcast %cst_50 : f32 to vector<1x1xf32>
      %c0_51 = arith.constant 0 : index
      %c0_52 = arith.constant 0 : index
      %77 = vector.load %arg7[%c0_51, %c0_52] : memref<1x1xf32, #tpu.memory_space<vmem>>, vector<1x1xf32>
      tpu.vector_store %arg7[%c0_51, %c0_52], %76 {strides = array<i32>} : memref<1x1xf32, #tpu.memory_space<vmem>>, vector<1x1xf32>,
      %cst_53 = arith.constant 0.000000e+00 : f32
      %78 = vector.broadcast %cst_53 : f32 to vector<1x1xf32>
      %c0_54 = arith.constant 0 : index
      %c0_55 = arith.constant 0 : index
      %79 = vector.load %arg8[%c0_54, %c0_55] : memref<1x1xf32, #tpu.memory_space<vmem>>, vector<1x1xf32>
      tpu.vector_store %arg8[%c0_54, %c0_55], %78 {strides = array<i32>} : memref<1x1xf32, #tpu.memory_space<vmem>>, vector<1x1xf32>,
      %cst_56 = arith.constant 0.000000e+00 : f32
      %80 = vector.broadcast %cst_56 : f32 to vector<1x1xf32>
      %c0_57 = arith.constant 0 : index
      %c0_58 = arith.constant 0 : index
      %81 = vector.load %arg9[%c0_57, %c0_58] : memref<1x1xf32, #tpu.memory_space<vmem>>, vector<1x1xf32>
      tpu.vector_store %arg9[%c0_57, %c0_58], %80 {strides = array<i32>} : memref<1x1xf32, #tpu.memory_space<vmem>>, vector<1x1xf32>,
      %cst_59 = arith.constant 0.000000e+00 : f32
      %82 = vector.broadcast %cst_59 : f32 to vector<1x1xf32>
      %c0_60 = arith.constant 0 : index
      %c0_61 = arith.constant 0 : index
      %83 = vector.load %arg10[%c0_60, %c0_61] : memref<1x1xf32, #tpu.memory_space<vmem>>, vector<1x1xf32>
      tpu.vector_store %arg10[%c0_60, %c0_61], %82 {strides = array<i32>} : memref<1x1xf32, #tpu.memory_space<vmem>>, vector<1x1xf32>,
    } else {
    }
    %c0 = arith.constant 0 : index
    %c0_1 = arith.constant 0 : index
    %c0_2 = arith.constant 0 : index
    %3 = vector.load %arg2[%c0, %c0_1, %c0_2] : memref<1x8x128xf32, #tpu.memory_space<vmem>>, vector<1x8x128xf32>
    %4 = vector.shape_cast %3 : vector<1x8x128xf32> to vector<8x128xf32>
    %c0_3 = arith.constant 0 : index
    %c0_4 = arith.constant 0 : index
    %c0_5 = arith.constant 0 : index
    %5 = vector.load %arg3[%c0_3, %c0_4, %c0_5] : memref<1x8x128xf32, #tpu.memory_space<vmem>>, vector<1x8x128xf32>
    %6 = vector.shape_cast %5 : vector<1x8x128xf32> to vector<8x128xf32>
    %7 = arith.negf %4 : vector<8x128xf32>
    %8 = math.exp %7 : vector<8x128xf32>
    %cst = arith.constant 1.000000e+00 : f32
    %9 = vector.broadcast %cst : f32 to vector<8x128xf32>
    %10 = arith.addf %9, %8 : vector<8x128xf32>
    %11 = arith.divf %9, %10 : vector<8x128xf32>
    %cst_6 = arith.constant 9.99999997E-7 : f32
    %cst_7 = arith.constant 0.999998986 : f32
    %12 = vector.broadcast %cst_6 : f32 to vector<8x128xf32>
    %13 = arith.maximumf %12, %11 : vector<8x128xf32>
    %14 = vector.broadcast %cst_7 : f32 to vector<8x128xf32>
    %15 = arith.minimumf %14, %13 : vector<8x128xf32>
    %cst_8 = arith.constant 0.000000e+00 : f32
    %16 = vector.broadcast %cst_8 : f32 to vector<8x128xf32>
    %17 = arith.cmpf ogt, %6, %16 : vector<8x128xf32>
    %cst_9 = arith.constant 0.000000e+00 : f32
    %18 = vector.broadcast %cst_9 : f32 to vector<8x128xf32>
    %19 = arith.cmpf oeq, %6, %18 : vector<8x128xf32>
    %cst_10 = arith.constant 1.000000e+00 : f32
    %20 = vector.broadcast %cst_10 : f32 to vector<8x128xf32>
    %21 = arith.subf %20, %15 : vector<8x128xf32>
    %22 = arith.select %17, %15, %21 : vector<8x128xi1>, vector<8x128xf32>
    %23 = math.log %22 : vector<8x128xf32>
    %cst_11 = arith.constant 0.000000e+00 : f32
    %24 = vector.broadcast %cst_11 : f32 to vector<8x128xf32>
    %25 = arith.subf %24, %23 : vector<8x128xf32>
    %c0_12 = arith.constant 0 : index
    %c0_13 = arith.constant 0 : index
    %26 = vector.load %arg6[%c0_12, %c0_13] : memref<1x1xf32, #tpu.memory_space<vmem>>, vector<1x1xf32>
    %27 = arith.mulf %25, %6 : vector<8x128xf32>
    %cst_14 = arith.constant 0.000000e+00 : f32
    %28 = vector.broadcast %cst_14 : f32 to vector<8x128xf32>
    %29 = arith.select %17, %27, %28 : vector<8x128xi1>, vector<8x128xf32>
    %cst_15 = arith.constant dense<0.000000e+00> : vector<8xf32>
    %30 = vector.multi_reduction <add>, %29, %cst_15 [1] : vector<8x128xf32> to vector<8xf32>
    %31 = vector.shape_cast %30 : vector<8xf32> to vector<8x1xf32>
    %cst_16 = arith.constant dense<0.000000e+00> : vector<1xf32>
    %32 = vector.multi_reduction <add>, %31, %cst_16 [0] : vector<8x1xf32> to vector<1xf32>
    %33 = vector.shape_cast %32 : vector<1xf32> to vector<1x1xf32>
    %34 = arith.addf %26, %33 : vector<1x1xf32>
    %c0_17 = arith.constant 0 : index
    %c0_18 = arith.constant 0 : index
    %35 = vector.load %arg6[%c0_17, %c0_18] : memref<1x1xf32, #tpu.memory_space<vmem>>, vector<1x1xf32>
    tpu.vector_store %arg6[%c0_17, %c0_18], %34 {strides = array<i32>} : memref<1x1xf32, #tpu.memory_space<vmem>>, vector<1x1xf32>,
    %c0_19 = arith.constant 0 : index
    %c0_20 = arith.constant 0 : index
    %36 = vector.load %arg7[%c0_19, %c0_20] : memref<1x1xf32, #tpu.memory_space<vmem>>, vector<1x1xf32>
    %cst_21 = arith.constant 0.000000e+00 : f32
    %37 = vector.broadcast %cst_21 : f32 to vector<8x128xf32>
    %38 = arith.select %19, %25, %37 : vector<8x128xi1>, vector<8x128xf32>
    %cst_22 = arith.constant dense<0.000000e+00> : vector<8xf32>
    %39 = vector.multi_reduction <add>, %38, %cst_22 [1] : vector<8x128xf32> to vector<8xf32>
    %40 = vector.shape_cast %39 : vector<8xf32> to vector<8x1xf32>
    %cst_23 = arith.constant dense<0.000000e+00> : vector<1xf32>
    %41 = vector.multi_reduction <add>, %40, %cst_23 [0] : vector<8x1xf32> to vector<1xf32>
    %42 = vector.shape_cast %41 : vector<1xf32> to vector<1x1xf32>
    %43 = arith.addf %36, %42 : vector<1x1xf32>
    %c0_24 = arith.constant 0 : index
    %c0_25 = arith.constant 0 : index
    %44 = vector.load %arg7[%c0_24, %c0_25] : memref<1x1xf32, #tpu.memory_space<vmem>>, vector<1x1xf32>
    tpu.vector_store %arg7[%c0_24, %c0_25], %43 {strides = array<i32>} : memref<1x1xf32, #tpu.memory_space<vmem>>, vector<1x1xf32>,
    %c0_26 = arith.constant 0 : index
    %c0_27 = arith.constant 0 : index
    %45 = vector.load %arg8[%c0_26, %c0_27] : memref<1x1xf32, #tpu.memory_space<vmem>>, vector<1x1xf32>
    %cst_28 = arith.constant 1.000000e+00 : f32
    %cst_29 = arith.constant 0.000000e+00 : f32
    %46 = vector.broadcast %cst_28 : f32 to vector<8x128xf32>
    %47 = vector.broadcast %cst_29 : f32 to vector<8x128xf32>
    %48 = arith.select %17, %46, %47 : vector<8x128xi1>, vector<8x128xf32>
    %cst_30 = arith.constant dense<0.000000e+00> : vector<8xf32>
    %49 = vector.multi_reduction <add>, %48, %cst_30 [1] : vector<8x128xf32> to vector<8xf32>
    %50 = vector.shape_cast %49 : vector<8xf32> to vector<8x1xf32>
    %cst_31 = arith.constant dense<0.000000e+00> : vector<1xf32>
    %51 = vector.multi_reduction <add>, %50, %cst_31 [0] : vector<8x1xf32> to vector<1xf32>
    %52 = vector.shape_cast %51 : vector<1xf32> to vector<1x1xf32>
    %53 = arith.addf %45, %52 : vector<1x1xf32>
    %c0_32 = arith.constant 0 : index
    %c0_33 = arith.constant 0 : index
    %54 = vector.load %arg8[%c0_32, %c0_33] : memref<1x1xf32, #tpu.memory_space<vmem>>, vector<1x1xf32>
    tpu.vector_store %arg8[%c0_32, %c0_33], %53 {strides = array<i32>} : memref<1x1xf32, #tpu.memory_space<vmem>>, vector<1x1xf32>,
    %c0_34 = arith.constant 0 : index
    %c0_35 = arith.constant 0 : index
    %55 = vector.load %arg9[%c0_34, %c0_35] : memref<1x1xf32, #tpu.memory_space<vmem>>, vector<1x1xf32>
    %56 = arith.addf %11, %6 : vector<8x128xf32>
    %cst_36 = arith.constant dense<0.000000e+00> : vector<8xf32>
    %57 = vector.multi_reduction <add>, %56, %cst_36 [1] : vector<8x128xf32> to vector<8xf32>
    %58 = vector.shape_cast %57 : vector<8xf32> to vector<8x1xf32>
    %cst_37 = arith.constant dense<0.000000e+00> : vector<1xf32>
    %59 = vector.multi_reduction <add>, %58, %cst_37 [0] : vector<8x1xf32> to vector<1xf32>
    %60 = vector.shape_cast %59 : vector<1xf32> to vector<1x1xf32>
    %61 = arith.addf %55, %60 : vector<1x1xf32>
    %c0_38 = arith.constant 0 : index
    %c0_39 = arith.constant 0 : index
    %62 = vector.load %arg9[%c0_38, %c0_39] : memref<1x1xf32, #tpu.memory_space<vmem>>, vector<1x1xf32>
    tpu.vector_store %arg9[%c0_38, %c0_39], %61 {strides = array<i32>} : memref<1x1xf32, #tpu.memory_space<vmem>>, vector<1x1xf32>,
    %c0_40 = arith.constant 0 : index
    %c0_41 = arith.constant 0 : index
    %63 = vector.load %arg10[%c0_40, %c0_41] : memref<1x1xf32, #tpu.memory_space<vmem>>, vector<1x1xf32>
    %64 = arith.mulf %11, %6 : vector<8x128xf32>
    %cst_42 = arith.constant dense<0.000000e+00> : vector<8xf32>
    %65 = vector.multi_reduction <add>, %64, %cst_42 [1] : vector<8x128xf32> to vector<8xf32>
    %66 = vector.shape_cast %65 : vector<8xf32> to vector<8x1xf32>
    %cst_43 = arith.constant dense<0.000000e+00> : vector<1xf32>
    %67 = vector.multi_reduction <add>, %66, %cst_43 [0] : vector<8x1xf32> to vector<1xf32>
    %68 = vector.shape_cast %67 : vector<1xf32> to vector<1x1xf32>
    %69 = arith.addf %63, %68 : vector<1x1xf32>
    %c0_44 = arith.constant 0 : index
    %c0_45 = arith.constant 0 : index
    %70 = vector.load %arg10[%c0_44, %c0_45] : memref<1x1xf32, #tpu.memory_space<vmem>>, vector<1x1xf32>
    tpu.vector_store %arg10[%c0_44, %c0_45], %69 {strides = array<i32>} : memref<1x1xf32, #tpu.memory_space<vmem>>, vector<1x1xf32>,
    %c3_i32 = arith.constant 3 : i32
    %71 = arith.cmpi eq, %arg1, %c3_i32 : i32
    %72 = arith.extui %71 : i1 to i32
    %c0_i32_46 = arith.constant 0 : i32
    %73 = arith.cmpi ne, %72, %c0_i32_46 : i32
    scf.if %73 {
      %c0_47 = arith.constant 0 : index
      %c0_48 = arith.constant 0 : index
      %74 = vector.load %arg8[%c0_47, %c0_48] : memref<1x1xf32, #tpu.memory_space<vmem>>, vector<1x1xf32>
      %cst_49 = arith.constant 4.096000e+03 : f32
      %75 = vector.broadcast %cst_49 : f32 to vector<1x1xf32>
      %76 = arith.subf %75, %74 : vector<1x1xf32>
      %c0_50 = arith.constant 0 : index
      %c0_51 = arith.constant 0 : index
      %77 = vector.load %arg6[%c0_50, %c0_51] : memref<1x1xf32, #tpu.memory_space<vmem>>, vector<1x1xf32>
      %78 = arith.divf %77, %74 : vector<1x1xf32>
      %c0_52 = arith.constant 0 : index
      %c0_53 = arith.constant 0 : index
      %79 = vector.load %arg7[%c0_52, %c0_53] : memref<1x1xf32, #tpu.memory_space<vmem>>, vector<1x1xf32>
      %80 = arith.divf %79, %76 : vector<1x1xf32>
      %81 = arith.addf %78, %80 : vector<1x1xf32>
      %c0_54 = arith.constant 0 : index
      %c0_55 = arith.constant 0 : index
      %c0_56 = arith.constant 0 : index
      %82 = vector.load %arg4[%c0_54, %c0_55, %c0_56] : memref<1x1x1xf32, #tpu.memory_space<vmem>>, vector<1x1x1xf32>
      %83 = vector.shape_cast %82 : vector<1x1x1xf32> to vector<1x1xf32>
      %84 = vector.shape_cast %81 : vector<1x1xf32> to vector<1x1x1xf32>
      tpu.vector_store %arg4[%c0_54, %c0_55, %c0_56], %84 {strides = array<i32>} : memref<1x1x1xf32, #tpu.memory_space<vmem>>, vector<1x1x1xf32>,
      %c0_57 = arith.constant 0 : index
      %c0_58 = arith.constant 0 : index
      %85 = vector.load %arg9[%c0_57, %c0_58] : memref<1x1xf32, #tpu.memory_space<vmem>>, vector<1x1xf32>
      %cst_59 = arith.constant 9.99999997E-7 : f32
      %86 = vector.broadcast %cst_59 : f32 to vector<1x1xf32>
      %87 = arith.addf %85, %86 : vector<1x1xf32>
      %c0_60 = arith.constant 0 : index
      %c0_61 = arith.constant 0 : index
      %88 = vector.load %arg10[%c0_60, %c0_61] : memref<1x1xf32, #tpu.memory_space<vmem>>, vector<1x1xf32>
      %cst_62 = arith.constant 2.000000e+00 : f32
      %89 = vector.broadcast %cst_62 : f32 to vector<1x1xf32>
      %90 = arith.mulf %89, %88 : vector<1x1xf32>
      %cst_63 = arith.constant 9.99999997E-7 : f32
      %91 = vector.broadcast %cst_63 : f32 to vector<1x1xf32>
      %92 = arith.addf %90, %91 : vector<1x1xf32>
      %93 = arith.divf %87, %92 : vector<1x1xf32>
      %c0_64 = arith.constant 0 : index
      %c0_65 = arith.constant 0 : index
      %c0_66 = arith.constant 0 : index
      %94 = vector.load %arg5[%c0_64, %c0_65, %c0_66] : memref<1x1x1xf32, #tpu.memory_space<vmem>>, vector<1x1x1xf32>
      %95 = vector.shape_cast %94 : vector<1x1x1xf32> to vector<1x1xf32>
      %96 = vector.shape_cast %93 : vector<1x1xf32> to vector<1x1x1xf32>
      tpu.vector_store %arg5[%c0_64, %c0_65, %c0_66], %96 {strides = array<i32>} : memref<1x1x1xf32, #tpu.memory_space<vmem>>, vector<1x1x1xf32>,
    } else {
    }
    return
  }
  func.func @transform_0(%arg0: i32, %arg1: i32) -> (i32, i32, i32) {
    %c0_i32 = arith.constant 0 : i32
    %c0_i32_0 = arith.constant 0 : i32
    return %arg0, %arg1, %c0_i32 : i32, i32, i32
  }
  func.func @transform_1(%arg0: i32, %arg1: i32) -> (i32, i32, i32) {
    %c0_i32 = arith.constant 0 : i32
    %c0_i32_0 = arith.constant 0 : i32
    return %arg0, %arg1, %c0_i32 : i32, i32, i32
  }
  func.func @transform_2(%arg0: i32, %arg1: i32) -> (i32, i32, i32) {
    %c0_i32 = arith.constant 0 : i32
    %c0_i32_0 = arith.constant 0 : i32
    %c0_i32_1 = arith.constant 0 : i32
    return %arg0, %c0_i32, %c0_i32_0 : i32, i32, i32
  }
  func.func @transform_3(%arg0: i32, %arg1: i32) -> (i32, i32, i32) {
    %c0_i32 = arith.constant 0 : i32
    %c0_i32_0 = arith.constant 0 : i32
    %c0_i32_1 = arith.constant 0 : i32
    return %arg0, %c0_i32, %c0_i32_0 : i32, i32, i32
  }
}

</mosaic_0001>

<bundles_post_ra>
// kernel: tpu_custom_call.1
= control target key start
LH: loop header
LB: loop body
LE: loop exit
PB: predicated region body
PF: predicated region fallthrough
CT: control target
= control target key end

     0   :  { %9 = vsyncpa [#allocation8], 0  ;;  %s927_s0 = inlined_call_operand.hbm [shape: f32[2,32,128], index: 0, kind: input, shape index: {}]   ;;  %s928_s1 = inlined_call_operand.hbm [shape: f32[2,32,128], index: 1, kind: input, shape index: {}]   ;;  %s929_s2 = inlined_call_operand.vmem [shape: f32[2,1,1], index: 2, kind: output, shape index: {0}]   ;;  %s930_s3 = inlined_call_operand.vmem [shape: f32[2,1,1], index: 3, kind: output, shape index: {1}]  }
   0x1   :  { %11 = vsyncpa [#allocation8 + $0x1], 0 }
   0x2   :  { %12 = vsyncpa [#allocation10], 0 }
   0x3   :  { %14 = vsyncpa [#allocation10 + $0x1], 0  ;;  %s743_s12 = smov 0   ;;  %s745_s13 = smov 0  }
   0x4   :  { %s747_s14 = smov 0   ;;  %s749_s15 = smov 0  }
   0x5   :  { %s751_s16 = smov 0   ;;  %s753_s17 = smov 0  }
   0x6   :  { %s755_s18 = smov 0   ;;  %s757_s19 = smov 0  }
   0x7 LB: > { %s483_s20 = sadd.s32 4294967295, %s717_s19   ;;  %s29_s21 = sadd.s32 1, %s709_s17  ;;  %s717_s19 = sphi %s757_s19, %s20_s19   ;;  %s713_s18 = sphi %s755_s18, %s941_s18   ;;  %s709_s17 = sphi %s753_s17, %s940_s17   ;;  %s705_s16 = sphi %s751_s16, %s939_s16   ;;  %s701_s15 = sphi %s749_s15, %s938_s15   ;;  %s697_s14 = sphi %s747_s14, %s937_s14   ;;  %s693_s13 = sphi %s745_s13, %s936_s13   ;;  %s689_s12 = sphi %s743_s12, %s935_s12  }
   0x8   : > { %p30_p0 = scmp.ge.s32.totalorder %s29_s21, 4  ;;  %s32_s22 = sadd.s32 1, %s713_s18 }
   0x9   : > { %s41_s23 = sadd.s32 1, %s697_s14  ;;  %p48_p1 = scmp.ne.s32.totalorder %s697_s14, %s693_s13 }
   0xa   : > { %s943_s21 = smov (%p30_p0, %s29_s21), 0  ;;  %s945_s22 = smov (!%p30_p0, %s32_s22), %s713_s18 }
   0xb   : > { %s37_s24 = ssub.s32 %s709_s17, %s943_s21  ;;  %p49_p2 = scmp.eq.s32.totalorder %s717_s19, 0 }
   0xc   : > { %p34_p3 = scmp.ge.s32.totalorder %s945_s22, 2  ;;  %p54_p4 = scmp.ne.s32.totalorder %s693_s13, %s689_s12 }
   0xd   : > { %p794_p5 = por %p49_p2, %p48_p1  ;;  %p55_p6 = scmp.eq.s32.totalorder %s483_s20, 0 }
   0xe   : > { %s947_s22 = smov (%p34_p3, %s945_s22), 0  ;;  %p512_p8 = scmp.lt.s32.totalorder %s717_s19, 8 }
   0xf   : > { %p800_p7 = por %p55_p6, %p54_p4  ;;  %s36_s27 = ssub.s32 %s713_s18, %s947_s22 }
  0x10   : > { %s38_s28 = sor.u32 %s37_s24, %s36_s27  ;;  %s808_s29 = sand.u32 1, %s697_s14  }
  0x11   : > { %p39_p9 = scmp.eq.s32.totalorder %s38_s28, 0  ;;  %s487_s30 = sshll.u32 %s808_s29, 3 }
  0x12   : > { %s488_s4 = sshll.u32 %s713_s18, 2  ;;  %s162_s8 = scalar_lea.vmem [#allocation7], %s487_s30 }
  0x13   : > { %s813_s5 = scalar_select %p39_p9, %s697_s14, %s41_s23  }
  0x14   : > { %s167_s6 = sadd.s32 %s709_s17, %s488_s4  ;;  %s171_s9 = sshll.u32 %s162_s8, 4  ;;  %s172_s9 = int_to_ptr.vmem [resolvable:$true] %s171_s9 }
  0x15   : > { %s489_s7 = sshll.u32 %s167_s6, 7  ;;  %p825_p10 = pnand %p512_p8, %p794_p5 }
  0x16   : > { %s169_s12 = scalar_lea.hbm %s927_s0, %s489_s7  ;;  %p493_p11 = scmp.ge.s32.totalorder %s717_s19, 1 }
  0x17   : > { %p196_p12 = scmp.lt.s32.totalorder %s717_s19, 9  ;;  %s159_s23 = scalar_lea.sflag [#allocation8], %s808_s29 }
  0x18   : > { %p593_p13 = pneg %p825_p10  ;;  %s604_s24 = scalar_lea.vmem %s172_s9, 128 }
  0x19   : > { %p605_p0 = scmp.ne.s32.totalorder %s172_s9, %s604_s24  ;;  %s719_s27 = smov [#allocation7]  }
  0x1a   : > { %s609_s25 = sshll.u32 %s719_s27, 4  ;;  %s610_s25 = int_to_ptr.vmem [resolvable:$false] %s609_s25 }
  0x1b   : > { %p607_p1 = pnand %p605_p0, %p593_p13  ;;  %s611_s28 = scalar_lea.vmem %s610_s25, 256 }
  0x1c   : > { %p612_p3 = scmp.lt.s32.totalorder %s172_s9, %s610_s25  ;;  %p613_p4 = scmp.lt.s32.totalorder %s611_s28, %s604_s24 }
  0x1d   : > { %p608_p2 = pneg %p607_p1 }
  0x1e   : > { %p614_p5 = por %p613_p4, %p612_p3 }
  0x20   : > { %p615_p6 = pnand %p614_p5, %p608_p2 }
  0x22   : > { %618 = shalt.err (!%p615_p6)
}
  0x23   : > { %508 = dma.hbm_to_vmem [thread:$0]  (!%p825_p10), %s169_s12, 128, %s172_s9, %s159_s23  }
  0x24   : > { %p843_p8 = pnand %p493_p11, %p196_p12  ;;  %s189_s10 = scalar_lea.hbm %s928_s1, %s489_s7 }
  0x25   : > { %s182_s11 = scalar_lea.vmem [#allocation9], %s487_s30  ;;  %s179_s27 = scalar_lea.sflag [#allocation10], %s808_s29 }
  0x26   : > { %s191_s24 = sshll.u32 %s182_s11, 4  ;;  %s720_s9 = smov [#allocation9]   ;;  %s192_s24 = int_to_ptr.vmem [resolvable:$true] %s191_s24 }
  0x27   : > { %s632_s25 = scalar_lea.vmem %s192_s24, 128  ;;  %s637_s12 = sshll.u32 %s720_s9, 4  ;;  %s638_s12 = int_to_ptr.vmem [resolvable:$false] %s637_s12 }
  0x28   : > { %p633_p9 = scmp.ne.s32.totalorder %s192_s24, %s632_s25  ;;  %s639_s23 = scalar_lea.vmem %s638_s12, 256 }
  0x29   : > { %p640_p11 = scmp.lt.s32.totalorder %s192_s24, %s638_s12  ;;  %p641_p12 = scmp.lt.s32.totalorder %s639_s23, %s632_s25 }
  0x2a   : > { %p635_p0 = pnand %p633_p9, %p593_p13 }
  0x2b   : > { %p642_p2 = por %p641_p12, %p640_p11 }
  0x2c   : > { %p636_p1 = pneg %p635_p0 }
  0x2e   : > { %p643_p3 = pnand %p642_p2, %p636_p1 }
  0x30   : > { %646 = shalt.err (!%p643_p3)
}
  0x31   : > { %511 = dma.hbm_to_vmem [thread:$0]  (!%p825_p10), %s189_s10, 128, %s192_s24, %s179_s27  }
  0x32   : > { %200 = sbr.rel (%p843_p8) target bundleno = 317 (0x13d), region = 28  ;;  %s202_s29 = sand.u32 (!%p843_p8), 1, %s693_s13  }
  0x33   : > { %s494_s30 = sshll.u32 (!%p843_p8), %s202_s29, 3  ;;  %s203_s7 = scalar_lea.sflag (!%p843_p8), [#allocation8], %s202_s29 }
  0x34   : > { %s206_s28 = scalar_lea.vmem (!%p843_p8), [#allocation7], %s494_s30 }
  0x37   : > { %680 = dma.done.wait (%p800_p7), %s203_s7, 128  }
  0x38   : > { %682 = vsyncadd (%p800_p7), %s203_s7, 4294967168  ;;  %s212_s6 = scalar_lea.sflag [#allocation10], %s202_s29  ;;  %s215_s8 = scalar_lea.vmem [#allocation9], %s494_s30 }
  0x39   : > { %684 = dma.done.wait (%p800_p7), %s212_s6, 128  }
  0x3a   : > { %686 = vsyncadd (%p800_p7), %s212_s6, 4294967168  ;;  %p244_p10 = scmp.lt.s32.totalorder %s705_s16, 1  ;;  %p496_p13 = scmp.ne.s32.totalorder %s701_s15, 0 }
  0x3c   : > { %s949_s16 = smov (!%p244_p10, %s705_s16), 1  ;;  %253 = sbr.rel (%p496_p13) target bundleno = 69 (0x45), region = 40 }
  0x3d   : > { %s246_s10 = scalar_lea.vmem %s929_s2, %s949_s16  ;;  %s249_s27 = scalar_lea.vmem %s930_s3, %s949_s16 }
  0x41   : > { %vm254_vm0 = vcmask 0   ;;  %v721_v0 = vmov 0.0  }
  0x42   : > { %255 = vst.msk [vmem:[#allocation2] sm:$0x1] %vm254_vm0, %v721_v0  ;;  %256 = vst.msk [vmem:[#allocation3] sm:$0x1] %vm254_vm0, %v721_v0 }
  0x43   : > { %257 = vst.msk [vmem:[#allocation4] sm:$0x1] %vm254_vm0, %v721_v0  ;;  %258 = vst.msk [vmem:[#allocation5] sm:$0x1] %vm254_vm0, %v721_v0 }
  0x44   : > { %259 = vst.msk [vmem:[#allocation6] sm:$0x1] %vm254_vm0, %v721_v0 }
  0x45 PF: > { %v261_v1 = vld [vmem:[%s215_s8] sm:$0xff]  ;;  %v260_v2 = vld [vmem:[%s206_s28] sm:$0xff]  ;;  %v722_v4 = vmov 0.0   ;;  %vm289_vm3 = vcmask 0   ;;  %p498_p7 = scmp.ne.s32.totalorder %s701_s15, 3 }
  0x46   : > { %vm270_vm1 = vcmp.gt.f32.partialorder %v261_v1, 0.0  ;;  %v497_v3 = vmul.f32 -1.442695, %v260_v2  ;;  %vm271_vm2 = vcmp.eq.f32.partialorder %v261_v1, 0.0 }
  0x47   : > { %v304_v5 = vsel %vm270_vm1, 1.0, %v722_v4 }
  0x48   : > { %305 = vadd.xlane.f32.xlu1 %v304_v5  ;;  %579 = vpow2.f32 %v497_v3 }
  0x49   : > { %v291_v51 = vld [vmem:[#allocation3] sm:$0x1]  ;;  %v277_v58 = vld [vmem:[#allocation2] sm:$0x1] }
  0x4a   : > { %v303_v27 = vld [vmem:[#allocation4] sm:$0x1]  ;;  %v315_v36 = vld [vmem:[#allocation5] sm:$0x1] }
  0x4b   : > { %v327_v63 = vld [vmem:[#allocation6] sm:$0x1] }
  0x55   : > { %v580_v6 = vpop.eup %579 }
  0x56   : > { %v265_v7 = vadd.f32 1.0, %v580_v6 }
  0x58   : > { %581 = vrcp.f32 %v265_v7 }
  0x65   : > { %v582_v8 = vpop.eup %581 }
  0x66   : > { %v268_v9 = vmax.f32 %v582_v8, 1e-06  ;;  %v316_v10 = vadd.f32 %v582_v8, %v261_v1  ;;  %v328_v20 = vmul.f32 %v582_v8, %v261_v1 }
  0x68   : > { %v269_v11 = vmin.f32 %v268_v9, 0.999999  ;;  %317 = vadd.xlane.f32.xlu1 %v316_v10 }
  0x6a   : > { %v272_v12 = vsub.f32 1.0, %v269_v11 }
  0x6c   : > { %v273_v13 = vsel %vm270_vm1, %v269_v11, %v272_v12 }
  0x6d   : > { %583 = vlog2.f32 %v273_v13 }
  0x7a   : > { %v584_v14 = vpop.eup %583 }
  0x7b   : > { %v275_v15 = vmul.f32 0.6931472, %v584_v14 }
  0x7d   : > { %v276_v16 = vsub.f32 0.0, %v275_v15 }
  0x7f   : > { %v292_v17 = vsel %vm271_vm2, %v276_v16, 0.0  ;;  %v278_v18 = vmul.f32 %v276_v16, %v261_v1 }
  0x80   : > { %293 = vadd.xlane.f32.xlu0 %v292_v17 }
  0x81   : > { %v279_v19 = vsel %vm270_vm1, %v278_v18, 0.0 }
  0x84   : > { %280 = vadd.xlane.f32.xlu0 %v279_v19 }
  0x88   : > { %329 = vadd.xlane.f32.xlu0 %v328_v20 }
  0xd1   : > { %v306_v21 = vpop.xlane.xlu1 %305 }
  0xd2   : > { %v307_v22 = vrot.slane %v306_v21, 4 }
  0xd4   : > { %v308_v23 = vadd.f32 %v307_v22, %v306_v21 }
  0xd6   : > { %v309_v24 = vrot.slane %v308_v23, 2 }
  0xd8   : > { %v310_v25 = vadd.f32 %v309_v24, %v308_v23 }
  0xda   : > { %v311_v26 = vrot.slane %v310_v25, 1 }
  0xdc   : > { %v312_v28 = vadd.f32 %v311_v26, %v310_v25 }
  0xde   : > { %v313_v29 = vadd.f32 %v312_v28, %v303_v27 }
  0xe0   : > { %314 = vst.msk [vmem:[#allocation4] sm:$0x1] %vm289_vm3, %v313_v29 }
  0xf1   : > { %v318_v30 = vpop.xlane.xlu1 %317 }
  0xf2   : > { %v319_v31 = vrot.slane %v318_v30, 4 }
  0xf4   : > { %v320_v32 = vadd.f32 %v319_v31, %v318_v30 }
  0xf6   : > { %v321_v33 = vrot.slane %v320_v32, 2 }
  0xf8   : > { %v322_v34 = vadd.f32 %v321_v33, %v320_v32 }
  0xfa   : > { %v323_v35 = vrot.slane %v322_v34, 1 }
  0xfc   : > { %v324_v37 = vadd.f32 %v323_v35, %v322_v34 }
  0xfe   : > { %v325_v38 = vadd.f32 %v324_v37, %v315_v36 }
 0x100   : > { %326 = vst.msk [vmem:[#allocation5] sm:$0x1] %vm289_vm3, %v325_v38 }
 0x109   : > { %v294_v39 = vpop.xlane.xlu0 %293 }
 0x10a   : > { %v295_v40 = vrot.slane %v294_v39, 4 }
 0x10c   : > { %v296_v41 = vadd.f32 %v295_v40, %v294_v39 }
 0x10d   : > { %v281_v42 = vpop.xlane.xlu0 %280 }
 0x10e   : > { %v297_v43 = vrot.slane %v296_v41, 2  ;;  %v282_v44 = vrot.slane %v281_v42, 4 }
 0x110   : > { %v298_v45 = vadd.f32 %v297_v43, %v296_v41  ;;  %v283_v46 = vadd.f32 %v282_v44, %v281_v42 }
 0x111   : > { %v330_v47 = vpop.xlane.xlu0 %329 }
 0x112   : > { %v299_v48 = vrot.slane %v298_v45, 1  ;;  %v284_v49 = vrot.slane %v283_v46, 2  ;;  %v331_v50 = vrot.slane %v330_v47, 4 }
 0x114   : > { %v300_v52 = vadd.f32 %v299_v48, %v298_v45  ;;  %v285_v53 = vadd.f32 %v284_v49, %v283_v46  ;;  %v332_v54 = vadd.f32 %v331_v50, %v330_v47 }
 0x116   : > { %v301_v55 = vadd.f32 %v300_v52, %v291_v51  ;;  %v286_v56 = vrot.slane %v285_v53, 1  ;;  %v333_v57 = vrot.slane %v332_v54, 2 }
 0x118   : > { %302 = vst.msk [vmem:[#allocation3] sm:$0x1] %vm289_vm3, %v301_v55  ;;  %v287_v59 = vadd.f32 %v286_v56, %v285_v53  ;;  %v334_v60 = vadd.f32 %v333_v57, %v332_v54 }
 0x11a   : > { %v288_v61 = vadd.f32 %v287_v59, %v277_v58  ;;  %v335_v62 = vrot.slane %v334_v60, 1 }
 0x11c   : > { %290 = vst.msk [vmem:[#allocation2] sm:$0x1] %vm289_vm3, %v288_v61  ;;  %v336_v0 = vadd.f32 %v335_v62, %v334_v60  ;;  %342 = sbr.rel (%p498_p7) target bundleno = 317 (0x13d), region = 44 }
 0x11e   : > { %v337_v1 = vadd.f32 %v336_v0, %v327_v63 }
 0x120   : > { %338 = vst.msk [vmem:[#allocation6] sm:$0x1] %vm289_vm3, %v337_v1 }
 0x121   : > { %v343_v2 = vld [vmem:[#allocation4] sm:$0x1]  ;;  %v353_v8 = vld [vmem:[#allocation5] sm:$0x1]  ;;  %v348_v10 = vld [vmem:[#allocation3] sm:$0x1] }
 0x122   : > { %v344_v3 = vsub.f32 4096.0, %v343_v2  ;;  %585 = vrcp.f32 %v343_v2  ;;  %v354_v13 = vadd.f32 1e-06, %v353_v8 }
 0x123   : > { %v345_v7 = vld [vmem:[#allocation2] sm:$0x1] }
 0x124   : > { %587 = vrcp.f32 %v344_v3 }
 0x127   : > { %v355_v4 = vld [vmem:[#allocation6] sm:$0x1] }
 0x128   : > { %v356_v5 = vmul.f32 2.0, %v355_v4 }
 0x12a   : > { %v357_v6 = vadd.f32 1e-06, %v356_v5 }
 0x12c   : > { %589 = vrcp.f32 %v357_v6 }
 0x12f   : > { %v586_v9 = vpop.eup %585 }
 0x130   : > { %v347_v11 = vmul.f32 %v586_v9, %v345_v7 }
 0x131   : > { %v588_v12 = vpop.eup %587 }
 0x132   : > { %v350_v14 = vmul.f32 %v588_v12, %v348_v10 }
 0x134   : > { %v351_v16 = vadd.f32 %v350_v14, %v347_v11 }
 0x136   : > { %352 = vst.msk [vmem:[%s246_s10] sm:$0x1] %vm289_vm3, %v351_v16 }
 0x139   : > { %v590_v15 = vpop.eup %589 }
 0x13a   : > { %v359_v17 = vmul.f32 %v590_v15, %v354_v13 }
 0x13c   : > { %360 = vst.msk [vmem:[%s249_s27] sm:$0x1] %vm289_vm3, %v359_v17 }
 0x13d PF: > { %s20_s19 = sadd.s32 1, %s717_s19   ;;  %s935_s12 = smov %s693_s13 }
 0x13e   : > { %p17_p4 = scmp.ge.s32.totalorder %s20_s19, 10   ;;  %s936_s13 = smov %s697_s14 }
 0x13f   : > { %s937_s14 = smov %s813_s5  ;;  %s938_s15 = smov %s709_s17 }
 0x140   : > { %s939_s16 = smov %s713_s18  ;;  %s940_s17 = smov %s943_s21 }
 0x141   : > { %s941_s18 = smov %s947_s22  ;;  %19 = sbr.rel (!%p17_p4) target bundleno = 7 (0x7), region = 101 }
 0x146   :  { %390 = vsyncpa [#allocation8], 1 }
 0x147   :  { %392 = vsyncpa [#allocation8 + $0x1], 1 }
 0x148   :  { %393 = vsyncpa [#allocation10], 1 }
 0x149   :  { %395 = vsyncpa [#allocation10 + $0x1], 1 }

</bundles_post_ra>
